<compile_context>
chip_gen: v6e
topology: v6e:2x2x1
jax: 0.10.0
libtpu: 0.0.40
codegen_flags: <defaults>
</compile_context>

<pallas_src>
import numpy as np
import jax
import jax.numpy as jnp
from jax.experimental import pallas as pl
from jax.experimental.pallas import tpu as pltpu

NUM_FILTERS = 100
NF_PAD = 128                                  # 128-lane-aligned slot per bank
KERNEL_SIZES = (3, 4, 5)
KMAX = max(KERNEL_SIZES)
N_SLOTS = len(KERNEL_SIZES) * NF_PAD          # 384
C_PAD = 128                                   # lane-dense logits block


def _round_up(x, m):
    return (x + m - 1) // m * m


def textcnn_kernel(x_ref, wc_ref, bc_ref, thr_ref, wfc_ref, bfc_ref, out_ref):
    # x_ref   : (b_tile*L_pad, KMAX*E) im2row-unrolled embeddings (f32 or bf16)
    # wc_ref  : (KMAX*E, 384)          fused conv weights, banks in 128-lane slots
    # bc_ref  : (1, 384)               conv biases
    # thr_ref : (1, 384) int32         per-slot validity threshold (L - k, -1 on pads)
    # wfc_ref : (384, 128), bfc_ref: (1, 128)
    # out_ref : (b_tile, 128)
    b_tile = out_ref.shape[0]
    m_tile = x_ref.shape[0]
    n = bc_ref.shape[1]
    l_pad = m_tile // b_tile

    # One MXU push: all three banks, all taps, whole batch tile (K = KMAX*E).
    acc = jnp.dot(x_ref[...], wc_ref[...], preferred_element_type=jnp.float32)

    # bias + ReLU in f32 (VPU), then mask invalid (time, bank) positions built
    # from an in-kernel iota compare (no HBM-streamed mask).
    act = jnp.maximum(acc + bc_ref[...], 0.0)
    act = act.reshape(b_tile, l_pad, n)
    t_idx = jax.lax.broadcasted_iota(jnp.int32, (b_tile, l_pad, n), 1)
    act = jnp.where(t_idx <= thr_ref[...].reshape(1, 1, n), act, 0.0)

    # max-over-time per sample: (b_tile, L_pad, 384) -> (b_tile, 384)
    feat = jnp.max(act, axis=1)

    # dropout: identity at inference.  Batched FC, lane-dense output store.
    out_ref[...] = (jnp.dot(feat, wfc_ref[...],
                            preferred_element_type=jnp.float32) + bfc_ref[...])


def pack_params(params):
    """One-time (model-load) repack into the kernel's fused layout."""
    E = params["w3"].shape[1]
    C = params["fc_b"].shape[-1]
    wc = np.zeros((KMAX, E, N_SLOTS), np.float32)
    bc = np.zeros((1, N_SLOTS), np.float32)
    wfc = np.zeros((N_SLOTS, C_PAD), np.float32)
    fc_w = np.asarray(params["fc_w"], np.float32)
    banks = ((3, params["w3"], params["b3"]),
             (4, params["w4"], params["b4"]),
             (5, params["w5"], params["b5"]))
    for g, (k, w, b) in enumerate(banks):
        lo = g * NF_PAD
        wc[:k, :, lo:lo + NUM_FILTERS] = np.asarray(w, np.float32)
        bc[:, lo:lo + NUM_FILTERS] = np.asarray(b, np.float32)
        wfc[lo:lo + NUM_FILTERS, :C] = fc_w[g * NUM_FILTERS:(g + 1) * NUM_FILTERS, :]
    bfc = np.zeros((1, C_PAD), np.float32)
    bfc[:, :C] = np.asarray(params["fc_b"], np.float32)
    return {
        "embed": jnp.asarray(params["embed"], jnp.float32),
        "wc": jnp.asarray(wc.reshape(KMAX * E, N_SLOTS)),   # im2row layout
        "bc": jnp.asarray(bc),
        "wfc": jnp.asarray(wfc),
        "bfc": jnp.asarray(bfc),
    }


def _vmem_limit_bytes(b_tile, l_pad, e, use_bf16):
    op = 2 if use_bf16 else 4
    x_tile = b_tile * l_pad * KMAX * e * op
    act = b_tile * l_pad * N_SLOTS * 4
    weights = (KMAX * e * N_SLOTS * op + N_SLOTS * 4
               + N_SLOTS * C_PAD * 4 + C_PAD * 4 + N_SLOTS * 4)
    out_tile = b_tile * C_PAD * 4
    est = 2 * (x_tile + out_tile) + 3 * act + 2 * weights   # double-buffered I/O
    return int(min(max(4 * est + (2 << 20), 32 << 20), 100 << 20))


def textcnn_forward(token_ids, packed, *, class_num, b_tile=8, use_bf16=False):
    # Embedding lookup (gather) stays in plain JAX; everything else in-kernel.
    emb = packed["embed"][token_ids].astype(jnp.float32)      # (B, L, E)
    B, L, E = emb.shape
    assert L >= KMAX, "sequence shorter than largest conv kernel"

    L_pad = _round_up(L, 8)
    B_pad = _round_up(B, b_tile)

    # im2row in the wrapper: tap j occupies lanes [j*E, (j+1)*E).  Per-sample
    # slices of the zero-padded (B_pad, L_pad+KMAX-1, E) tensor, so no
    # cross-sample contamination; invalid trailing time positions are masked
    # in-kernel.
    emb_p = jnp.pad(emb, ((0, B_pad - B), (0, L_pad + KMAX - 1 - L), (0, 0)))
    x = jnp.concatenate([emb_p[:, j:j + L_pad, :] for j in range(KMAX)], axis=-1)
    x = x.reshape(B_pad * L_pad, KMAX * E)

    wc = packed["wc"]
    if use_bf16:                      # bf16 MXU operands, f32 accumulate
        x = x.astype(jnp.bfloat16)
        wc = wc.astype(jnp.bfloat16)

    # Per-slot validity threshold (valid iff t <= L - k); -1 on padded lanes.
    thr_np = np.full((1, N_SLOTS), -1, np.int32)
    for g, k in enumerate(KERNEL_SIZES):
        thr_np[:, g * NF_PAD:g * NF_PAD + NUM_FILTERS] = L - k
    thr = jnp.asarray(thr_np)

    m_tile = b_tile * L_pad
    grid = (B_pad // b_tile,)

    out = pl.pallas_call(
        textcnn_kernel,
        out_shape=jax.ShapeDtypeStruct((B_pad, C_PAD), jnp.float32),
        grid_spec=pltpu.PrefetchScalarGridSpec(
            num_scalar_prefetch=0,
            grid=grid,
            in_specs=[
                pl.BlockSpec((m_tile, KMAX * E), lambda b: (b, 0)),   # tiled x
                pl.BlockSpec(wc.shape, lambda b: (0, 0)),             # resident
                pl.BlockSpec(packed["bc"].shape, lambda b: (0, 0)),
                pl.BlockSpec(thr.shape, lambda b: (0, 0)),
                pl.BlockSpec(packed["wfc"].shape, lambda b: (0, 0)),
                pl.BlockSpec(packed["bfc"].shape, lambda b: (0, 0)),
            ],
            out_specs=pl.BlockSpec((b_tile, C_PAD), lambda b: (b, 0)),
        ),
        compiler_params=pltpu.CompilerParams(
            dimension_semantics=("parallel",),
            vmem_limit_bytes=_vmem_limit_bytes(b_tile, L_pad, E, use_bf16),
        ),
    )(x, wc, packed["bc"], thr, packed["wfc"], packed["bfc"])
    return out[:B, :class_num]


def textcnn_ref(token_ids, params):
    # Pure-JAX reference (shift-matmul formulation, identical to PyTorch math).
    emb = params["embed"][token_ids].astype(jnp.float32)
    B, L, E = emb.shape
    feats = []
    for k, w, b in ((3, params["w3"], params["b3"]),
                    (4, params["w4"], params["b4"]),
                    (5, params["w5"], params["b5"])):
        l_out = L - k + 1
        acc = jnp.zeros((B, l_out, NUM_FILTERS), jnp.float32)
        for j in range(k):
            acc = acc + jnp.einsum("ble,ec->blc", emb[:, j:j + l_out, :], w[j])
        acc = jax.nn.relu(acc + b[None, :, :])
        feats.append(jnp.max(acc, axis=1))
    feat = jnp.concatenate(feats, axis=1)
    return feat @ params["fc_w"] + params["fc_b"]


if __name__ == "__main__":
    vocab_size, embedding_dim, class_num = 50, 32, 5
    batch, seq_len = 2, 16

    key = jax.random.PRNGKey(0)
    keys = jax.random.split(key, 11)
    params = {
        "embed": 0.1 * jax.random.normal(keys[0], (vocab_size, embedding_dim), jnp.float32),
        "w3":    0.1 * jax.random.normal(keys[1], (3, embedding_dim, NUM_FILTERS), jnp.float32),
        "b3":    0.1 * jax.random.normal(keys[2], (1, NUM_FILTERS), jnp.float32),
        "w4":    0.1 * jax.random.normal(keys[3], (4, embedding_dim, NUM_FILTERS), jnp.float32),
        "b4":    0.1 * jax.random.normal(keys[4], (1, NUM_FILTERS), jnp.float32),
        "w5":    0.1 * jax.random.normal(keys[5], (5, embedding_dim, NUM_FILTERS), jnp.float32),
        "b5":    0.1 * jax.random.normal(keys[6], (1, NUM_FILTERS), jnp.float32),
        "fc_w":  0.1 * jax.random.normal(keys[7], (3 * NUM_FILTERS, class_num), jnp.float32),
        "fc_b":  0.1 * jax.random.normal(keys[8], (1, class_num), jnp.float32),
    }
    token_ids = jax.random.randint(keys[9], (batch, seq_len), 0, vocab_size)

    packed = pack_params(params)      # hoisted: pack once at model load
    fwd = jax.jit(textcnn_forward,
                  static_argnames=("class_num", "b_tile", "use_bf16"))

    # f32 path, strict tolerance against the f32 reference.
    out = jax.block_until_ready(fwd(token_ids, packed, class_num=class_num))
    ref = textcnn_ref(token_ids, params)
    assert out.shape == (batch, class_num)
    assert jnp.allclose(out, ref, atol=1e-4, rtol=1e-4), (out, ref)

    # Larger batch exercises the pipelined 'parallel' grid (grid=(2,)).
    big_ids = jax.random.randint(keys[10], (16, seq_len), 0, vocab_size)
    out_big = jax.block_until_ready(
        fwd(big_ids, packed, class_num=class_num, b_tile=8))
    ref_big = textcnn_ref(big_ids, params)
    assert jnp.allclose(out_big, ref_big, atol=1e-4, rtol=1e-4)

    # bf16 MXU operands (v6e/v7x fast path); f32 accumulate, relaxed tolerance.
    out_bf16 = jax.block_until_ready(
        fwd(token_ids, packed, class_num=class_num, use_bf16=True))
    assert jnp.allclose(out_bf16, ref, atol=2e-2, rtol=2e-2), (out_bf16, ref)

    print("KERNEL_OK")
</pallas_src>

<mosaic_0001>
module attributes {stable_mosaic.version = 11 : i64} {
  func.func @textcnn_kernel(%arg0: i32, %arg1: memref<128x160xf32, #tpu.memory_space<vmem>>, %arg2: memref<160x384xf32, #tpu.memory_space<vmem>>, %arg3: memref<1x384xf32, #tpu.memory_space<vmem>>, %arg4: memref<1x384xi32, #tpu.memory_space<vmem>>, %arg5: memref<384x128xf32, #tpu.memory_space<vmem>>, %arg6: memref<1x128xf32, #tpu.memory_space<vmem>>, %arg7: memref<8x128xf32, #tpu.memory_space<vmem>>) attributes {dimension_semantics = [#tpu.dimension_semantics<parallel>], iteration_bounds = array<i64: 1>, scalar_prefetch = 0 : i64, scratch_operands = 0 : i64, tpu.core_type = #tpu.core_type<tc>, window_params = [{transform_indices = @transform_0, window_bounds = array<i64: 128, 160>}, {pipeline_mode = #tpu.pipeline_mode<synchronous>, transform_indices = @transform_1, window_bounds = array<i64: 160, 384>}, {pipeline_mode = #tpu.pipeline_mode<synchronous>, transform_indices = @transform_2, window_bounds = array<i64: 1, 384>}, {pipeline_mode = #tpu.pipeline_mode<synchronous>, transform_indices = @transform_3, window_bounds = array<i64: 1, 384>}, {pipeline_mode = #tpu.pipeline_mode<synchronous>, transform_indices = @transform_4, window_bounds = array<i64: 384, 128>}, {pipeline_mode = #tpu.pipeline_mode<synchronous>, transform_indices = @transform_5, window_bounds = array<i64: 1, 128>}, {transform_indices = @transform_6, window_bounds = array<i64: 8, 128>}]} {
    %c0 = arith.constant 0 : index
    %c0_0 = arith.constant 0 : index
    %0 = vector.load %arg1[%c0, %c0_0] : memref<128x160xf32, #tpu.memory_space<vmem>>, vector<128x160xf32>
    %c0_1 = arith.constant 0 : index
    %c0_2 = arith.constant 0 : index
    %1 = vector.load %arg2[%c0_1, %c0_2] : memref<160x384xf32, #tpu.memory_space<vmem>>, vector<160x384xf32>
    %cst = arith.constant dense<0.000000e+00> : vector<128x384xf32>
    %2 = tpu.matmul %0, %1, %cst {dimension_numbers = #tpu.dot_dimension_numbers<[1], [0], [0], [1], [0, 0, 1, 1], [], []>} : vector<128x160xf32>, vector<160x384xf32>, vector<128x384xf32> -> vector<128x384xf32>
    %c0_3 = arith.constant 0 : index
    %c0_4 = arith.constant 0 : index
    %3 = vector.load %arg3[%c0_3, %c0_4] : memref<1x384xf32, #tpu.memory_space<vmem>>, vector<1x384xf32>
    %4 = vector.broadcast %3 : vector<1x384xf32> to vector<128x384xf32>
    %5 = arith.addf %2, %4 : vector<128x384xf32>
    %cst_5 = arith.constant 0.000000e+00 : f32
    %6 = vector.broadcast %cst_5 : f32 to vector<128x384xf32>
    %7 = arith.maximumf %5, %6 : vector<128x384xf32>
    %8 = vector.shape_cast %7 : vector<128x384xf32> to vector<8x16x384xf32>
    %9 = tpu.iota {dimensions = array<i32: 1>} : vector<8x16x384xi32>
    %c0_6 = arith.constant 0 : index
    %c0_7 = arith.constant 0 : index
    %10 = vector.load %arg4[%c0_6, %c0_7] : memref<1x384xi32, #tpu.memory_space<vmem>>, vector<1x384xi32>
    %11 = vector.shape_cast %10 : vector<1x384xi32> to vector<1x1x384xi32>
    %12 = vector.broadcast %11 : vector<1x1x384xi32> to vector<8x16x384xi32>
    %13 = arith.cmpi sle, %9, %12 : vector<8x16x384xi32>
    %cst_8 = arith.constant 0.000000e+00 : f32
    %14 = vector.broadcast %cst_8 : f32 to vector<8x16x384xf32>
    %15 = arith.select %13, %8, %14 : vector<8x16x384xi1>, vector<8x16x384xf32>
    %cst_9 = arith.constant dense<0xFF800000> : vector<8x384xf32>
    %16 = vector.multi_reduction <maximumf>, %15, %cst_9 [1] : vector<8x16x384xf32> to vector<8x384xf32>
    %c0_10 = arith.constant 0 : index
    %c0_11 = arith.constant 0 : index
    %17 = vector.load %arg5[%c0_10, %c0_11] : memref<384x128xf32, #tpu.memory_space<vmem>>, vector<384x128xf32>
    %cst_12 = arith.constant dense<0.000000e+00> : vector<8x128xf32>
    %18 = tpu.matmul %16, %17, %cst_12 {dimension_numbers = #tpu.dot_dimension_numbers<[1], [0], [0], [1], [0, 0, 1, 1], [], []>} : vector<8x384xf32>, vector<384x128xf32>, vector<8x128xf32> -> vector<8x128xf32>
    %c0_13 = arith.constant 0 : index
    %c0_14 = arith.constant 0 : index
    %19 = vector.load %arg6[%c0_13, %c0_14] : memref<1x128xf32, #tpu.memory_space<vmem>>, vector<1x128xf32>
    %20 = vector.broadcast %19 : vector<1x128xf32> to vector<8x128xf32>
    %21 = arith.addf %18, %20 : vector<8x128xf32>
    %c0_15 = arith.constant 0 : index
    %c0_16 = arith.constant 0 : index
    %22 = vector.load %arg7[%c0_15, %c0_16] : memref<8x128xf32, #tpu.memory_space<vmem>>, vector<8x128xf32>
    tpu.vector_store %arg7[%c0_15, %c0_16], %21 {strides = array<i32>} : memref<8x128xf32, #tpu.memory_space<vmem>>, vector<8x128xf32>,
    return
  }
  func.func @transform_0(%arg0: i32) -> (i32, i32) {
    %c0_i32 = arith.constant 0 : i32
    %c0_i32_0 = arith.constant 0 : i32
    return %arg0, %c0_i32 : i32, i32
  }
  func.func @transform_1(%arg0: i32) -> (i32, i32) {
    %c0_i32 = arith.constant 0 : i32
    %c0_i32_0 = arith.constant 0 : i32
    %c0_i32_1 = arith.constant 0 : i32
    return %c0_i32, %c0_i32_0 : i32, i32
  }
  func.func @transform_2(%arg0: i32) -> (i32, i32) {
    %c0_i32 = arith.constant 0 : i32
    %c0_i32_0 = arith.constant 0 : i32
    %c0_i32_1 = arith.constant 0 : i32
    return %c0_i32, %c0_i32_0 : i32, i32
  }
  func.func @transform_3(%arg0: i32) -> (i32, i32) {
    %c0_i32 = arith.constant 0 : i32
    %c0_i32_0 = arith.constant 0 : i32
    %c0_i32_1 = arith.constant 0 : i32
    return %c0_i32, %c0_i32_0 : i32, i32
  }
  func.func @transform_4(%arg0: i32) -> (i32, i32) {
    %c0_i32 = arith.constant 0 : i32
    %c0_i32_0 = arith.constant 0 : i32
    %c0_i32_1 = arith.constant 0 : i32
    return %c0_i32, %c0_i32_0 : i32, i32
  }
  func.func @transform_5(%arg0: i32) -> (i32, i32) {
    %c0_i32 = arith.constant 0 : i32
    %c0_i32_0 = arith.constant 0 : i32
    %c0_i32_1 = arith.constant 0 : i32
    return %c0_i32, %c0_i32_0 : i32, i32
  }
  func.func @transform_6(%arg0: i32) -> (i32, i32) {
    %c0_i32 = arith.constant 0 : i32
    %c0_i32_0 = arith.constant 0 : i32
    return %arg0, %c0_i32 : i32, i32
  }
}

</mosaic_0001>

<bundles_post_ra>
// kernel: textcnn_forward.1
= control target key start
LH: loop header
LB: loop body
LE: loop exit
PB: predicated region body
PF: predicated region fallthrough
CT: control target
= control target key end

     0   :  { %v1150_v0 = vmov 0.0   ;;  %vm132_vm0 = vcmask 261120   ;;  %vm1151_vm1 = vmmov 0   ;;  %vm852_vm8 = vcmask 1041409   ;;  %s1928_s1 = inlined_call_operand.vmem [shape: f32[160,384], index: 1, kind: input, shape index: {}]   ;;  %s1929_s0 = inlined_call_operand.vmem [shape: f32[128,160], index: 0, kind: input, shape index: {}]   ;;  %s1930_s4 = inlined_call_operand.vmem [shape: f32[384,128], index: 4, kind: input, shape index: {}]   ;;  %s1931_s2 = inlined_call_operand.vmem [shape: f32[1,384], index: 2, kind: input, shape index: {}]   ;;  %s1932_s3 = inlined_call_operand.vmem [shape: s32[1,384], index: 3, kind: input, shape index: {}]   ;;  %s1933_s5 = inlined_call_operand.vmem [shape: f32[1,128], index: 5, kind: input, shape index: {}]   ;;  %s1934_s6 = inlined_call_operand.vmem [shape: f32[8,128], index: 6, kind: output, shape index: {}]  }
   0x1   :  { %342 = vmatprep.subr.mxu1 %v1150_v0  ;;  %v101_v1 = vld [vmem:[%s1928_s1 + $0x170] sm:$0xff]  ;;  %v102_v2 = vld [vmem:[%s1928_s1 + $0x178] sm:$0xff]  ;;  %v100_v3 = vld [vmem:[%s1928_s1 + $0x168] sm:$0xff]  ;;  %vm854_vm9 = vcmask 1042434   ;;  %vm856_vm10 = vcmask 1043459   ;;  %vm858_vm11 = vcmask 1044484  }
   0x2   :  { %181 = vmatprep.subr.mxu0 %v101_v1  ;;  %343 = vmatpush1.msra.mxu1 %v102_v2  ;;  %v98_v4 = vld [vmem:[%s1928_s1 + $0x158] sm:$0xff]  ;;  %v99_v5 = vld [vmem:[%s1928_s1 + $0x160] sm:$0xff]  ;;  %v97_v6 = vld [vmem:[%s1928_s1 + $0x150] sm:$0xff]  ;;  %vm860_vm12 = vcmask 1045509   ;;  %vm862_vm13 = vcmask 1046534   ;;  %vm864_vm14 = vcmask 1047559  }
   0x3   :  { %182 = vmatpush1.msra.mxu0 %v100_v3  ;;  %344 = vmatprep.subr.mxu1 %v1150_v0  ;;  %v95_v7 = vld [vmem:[%s1928_s1 + $0x140] sm:$0xff]  ;;  %v96_v8 = vld [vmem:[%s1928_s1 + $0x148] sm:$0xff]  ;;  %v94_v9 = vld [vmem:[%s1928_s1 + $0x138] sm:$0xff] }
   0x4   :  { %183 = vmatprep.subr.mxu0 %v98_v4  ;;  %345 = vmatpush1.msra.mxu1 %v99_v5  ;;  %v92_v10 = vld [vmem:[%s1928_s1 + $0x128] sm:$0xff]  ;;  %v93_v11 = vld [vmem:[%s1928_s1 + $0x130] sm:$0xff]  ;;  %v91_v12 = vld [vmem:[%s1928_s1 + $0x120] sm:$0xff] }
   0x5   :  { %184 = vmatpush1.msra.mxu0 %v97_v6  ;;  %346 = vmatprep.subr.mxu1 %v1150_v0  ;;  %v89_v13 = vld [vmem:[%s1928_s1 + $0x110] sm:$0xff]  ;;  %v90_v14 = vld [vmem:[%s1928_s1 + $0x118] sm:$0xff]  ;;  %v88_v15 = vld [vmem:[%s1928_s1 + $0x108] sm:$0xff] }
   0x6   :  { %185 = vmatprep.subr.mxu0 %v95_v7  ;;  %347 = vmatpush1.msra.mxu1 %v96_v8  ;;  %v86_v16 = vld [vmem:[%s1928_s1 + $0xf8] sm:$0xff]  ;;  %v87_v17 = vld [vmem:[%s1928_s1 + $0x100] sm:$0xff]  ;;  %v85_v18 = vld [vmem:[%s1928_s1 + $0xf0] sm:$0xff] }
   0x7   :  { %186 = vmatpush1.msra.mxu0 %v94_v9  ;;  %348 = vmatprep.subr.mxu1 %v1150_v0  ;;  %v83_v19 = vld [vmem:[%s1928_s1 + $0xe0] sm:$0xff]  ;;  %v84_v20 = vld [vmem:[%s1928_s1 + $0xe8] sm:$0xff]  ;;  %v82_v21 = vld [vmem:[%s1928_s1 + $0xd8] sm:$0xff] }
   0x8   :  { %187 = vmatprep.subr.mxu0 %v92_v10  ;;  %349 = vmatpush1.msra.mxu1 %v93_v11  ;;  %v80_v22 = vld [vmem:[%s1928_s1 + $0xc8] sm:$0xff]  ;;  %v81_v23 = vld [vmem:[%s1928_s1 + $0xd0] sm:$0xff]  ;;  %v79_v24 = vld [vmem:[%s1928_s1 + $0xc0] sm:$0xff] }
   0x9   :  { %188 = vmatpush1.msra.mxu0 %v91_v12  ;;  %350 = vmatprep.subr.mxu1 %v1150_v0  ;;  %v77_v25 = vld [vmem:[%s1928_s1 + $0xb0] sm:$0xff]  ;;  %v78_v26 = vld [vmem:[%s1928_s1 + $0xb8] sm:$0xff]  ;;  %v76_v27 = vld [vmem:[%s1928_s1 + $0xa8] sm:$0xff] }
   0xa   :  { %189 = vmatprep.subr.mxu0 %v89_v13  ;;  %351 = vmatpush1.msra.mxu1 %v90_v14  ;;  %v74_v28 = vld [vmem:[%s1928_s1 + $0x98] sm:$0xff]  ;;  %v75_v29 = vld [vmem:[%s1928_s1 + $0xa0] sm:$0xff]  ;;  %v73_v30 = vld [vmem:[%s1928_s1 + $0x90] sm:$0xff] }
   0xb   :  { %190 = vmatpush1.msra.mxu0 %v88_v15  ;;  %352 = vmatprep.subr.mxu1 %v1150_v0  ;;  %v71_v31 = vld [vmem:[%s1928_s1 + $0x80] sm:$0xff]  ;;  %v72_v32 = vld [vmem:[%s1928_s1 + $0x88] sm:$0xff]  ;;  %v70_v33 = vld [vmem:[%s1928_s1 + $0x78] sm:$0xff] }
   0xc   :  { %191 = vmatprep.subr.mxu0 %v86_v16  ;;  %353 = vmatpush1.msra.mxu1 %v87_v17  ;;  %v68_v34 = vld [vmem:[%s1928_s1 + $0x68] sm:$0xff]  ;;  %v69_v35 = vld [vmem:[%s1928_s1 + $0x70] sm:$0xff]  ;;  %v67_v36 = vld [vmem:[%s1928_s1 + $0x60] sm:$0xff] }
   0xd   :  { %192 = vmatpush1.msra.mxu0 %v85_v18  ;;  %354 = vmatprep.subr.mxu1 %v1150_v0  ;;  %v65_v37 = vld [vmem:[%s1928_s1 + $0x50] sm:$0xff]  ;;  %v66_v38 = vld [vmem:[%s1928_s1 + $0x58] sm:$0xff]  ;;  %v64_v39 = vld [vmem:[%s1928_s1 + $0x48] sm:$0xff] }
   0xe   :  { %193 = vmatprep.subr.mxu0 %v83_v19  ;;  %355 = vmatpush1.msra.mxu1 %v84_v20  ;;  %v62_v40 = vld [vmem:[%s1928_s1 + $0x38] sm:$0xff]  ;;  %v63_v41 = vld [vmem:[%s1928_s1 + $0x40] sm:$0xff]  ;;  %v61_v42 = vld [vmem:[%s1928_s1 + $0x30] sm:$0xff] }
   0xf   :  { %194 = vmatpush1.msra.mxu0 %v82_v21  ;;  %356 = vmatprep.subr.mxu1 %v1150_v0  ;;  %v59_v43 = vld [vmem:[%s1928_s1 + $0x20] sm:$0xff]  ;;  %v60_v44 = vld [vmem:[%s1928_s1 + $0x28] sm:$0xff]  ;;  %v58_v45 = vld [vmem:[%s1928_s1 + $0x18] sm:$0xff] }
  0x10   :  { %195 = vmatprep.subr.mxu0 %v80_v22  ;;  %357 = vmatpush1.msra.mxu1 %v81_v23  ;;  %v56_v46 = vld [vmem:[%s1928_s1 + $0x8] sm:$0xff]  ;;  %v57_v47 = vld [vmem:[%s1928_s1 + $0x10] sm:$0xff]  ;;  %v55_v48 = vld [vmem:[%s1928_s1] sm:$0xff] }
  0x11   :  { %196 = vmatpush1.msra.mxu0 %v79_v24  ;;  %358 = vmatprep.subr.mxu1 %v1150_v0  ;;  %v113_v49 = vld [vmem:[%s1928_s1 + $0x1d0] sm:$0xff]  ;;  %v114_v50 = vld [vmem:[%s1928_s1 + $0x1d8] sm:$0xff]  ;;  %v112_v51 = vld [vmem:[%s1928_s1 + $0x1c8] sm:$0xff] }
  0x12   :  { %197 = vmatprep.subr.mxu0 %v77_v25  ;;  %359 = vmatpush1.msra.mxu1 %v78_v26  ;;  %v110_v52 = vld [vmem:[%s1928_s1 + $0x1b8] sm:$0xff]  ;;  %v111_v53 = vld [vmem:[%s1928_s1 + $0x1c0] sm:$0xff]  ;;  %v109_v54 = vld [vmem:[%s1928_s1 + $0x1b0] sm:$0xff] }
  0x13   :  { %198 = vmatpush1.msra.mxu0 %v76_v27  ;;  %360 = vmatprep.subr.mxu1 %v1150_v0  ;;  %v107_v55 = vld [vmem:[%s1928_s1 + $0x1a0] sm:$0xff]  ;;  %v108_v56 = vld [vmem:[%s1928_s1 + $0x1a8] sm:$0xff]  ;;  %v106_v57 = vld [vmem:[%s1928_s1 + $0x198] sm:$0xff] }
  0x14   :  { %199 = vmatprep.subr.mxu0 %v74_v28  ;;  %361 = vmatpush1.msra.mxu1 %v75_v29  ;;  %v104_v58 = vld [vmem:[%s1928_s1 + $0x188] sm:$0xff]  ;;  %v105_v59 = vld [vmem:[%s1928_s1 + $0x190] sm:$0xff]  ;;  %v103_v61 = vld [vmem:[%s1928_s1 + $0x180] sm:$0xff] }
  0x15   :  { %200 = vmatpush1.msra.mxu0 %v73_v30  ;;  %362 = vmatprep.subr.mxu1 %v1150_v0  ;;  %v24_v60 = vld [vmem:[%s1929_s0 + $0x8] sm:$0xff]  ;;  %v23_v62 = vld [vmem:[%s1929_s0] sm:$0xff]  ;;  %v26_v63 = vld [vmem:[%s1929_s0 + $0x18] sm:$0xff] }
  0x16   :  { %201 = vmatprep.subr.mxu0 %v71_v31  ;;  %363 = vmatpush1.msra.mxu1 %v72_v32  ;;  %v25_v1 = vld [vmem:[%s1929_s0 + $0x10] sm:$0xff]  ;;  %v28_v2 = vld [vmem:[%s1929_s0 + $0x28] sm:$0xff]  ;;  %v27_v3 = vld [vmem:[%s1929_s0 + $0x20] sm:$0xff] }
  0x17   :  { %202 = vmatpush1.msra.mxu0 %v70_v33  ;;  %364 = vmatprep.subr.mxu1 %v1150_v0  ;;  %v30_v4 = vld [vmem:[%s1929_s0 + $0x38] sm:$0xff]  ;;  %v29_v5 = vld [vmem:[%s1929_s0 + $0x30] sm:$0xff]  ;;  %v32_v6 = vld [vmem:[%s1929_s0 + $0x48] sm:$0xff] }
  0x18   :  { %203 = vmatprep.subr.mxu0 %v68_v34  ;;  %365 = vmatpush1.msra.mxu1 %v69_v35  ;;  %v31_v7 = vld [vmem:[%s1929_s0 + $0x40] sm:$0xff]  ;;  %v34_v8 = vld [vmem:[%s1929_s0 + $0x58] sm:$0xff]  ;;  %v33_v9 = vld [vmem:[%s1929_s0 + $0x50] sm:$0xff] }
  0x19   :  { %204 = vmatpush1.msra.mxu0 %v67_v36  ;;  %366 = vmatprep.subr.mxu1 %v1150_v0  ;;  %v36_v10 = vld [vmem:[%s1929_s0 + $0x68] sm:$0xff]  ;;  %v35_v11 = vld [vmem:[%s1929_s0 + $0x60] sm:$0xff]  ;;  %v38_v12 = vld [vmem:[%s1929_s0 + $0x78] sm:$0xff] }
  0x1a   :  { %205 = vmatprep.subr.mxu0 %v65_v37  ;;  %367 = vmatpush1.msra.mxu1 %v66_v38  ;;  %v37_v13 = vld [vmem:[%s1929_s0 + $0x70] sm:$0xff]  ;;  %v40_v14 = vld [vmem:[%s1929_s0 + $0x88] sm:$0xff]  ;;  %v39_v15 = vld [vmem:[%s1929_s0 + $0x80] sm:$0xff] }
  0x1b   :  { %206 = vmatpush1.msra.mxu0 %v64_v39  ;;  %368 = vmatprep.subr.mxu1 %v1150_v0  ;;  %v42_v16 = vld [vmem:[%s1929_s0 + $0x98] sm:$0xff]  ;;  %v41_v17 = vld [vmem:[%s1929_s0 + $0x90] sm:$0xff]  ;;  %v44_v18 = vld [vmem:[%s1929_s0 + $0xa8] sm:$0xff] }
  0x1c   :  { %207 = vmatprep.subr.mxu0 %v62_v40  ;;  %369 = vmatpush1.msra.mxu1 %v63_v41  ;;  %v43_v19 = vld [vmem:[%s1929_s0 + $0xa0] sm:$0xff]  ;;  %v46_v20 = vld [vmem:[%s1929_s0 + $0xb8] sm:$0xff]  ;;  %v45_v21 = vld [vmem:[%s1929_s0 + $0xb0] sm:$0xff] }
  0x1d   :  { %208 = vmatpush1.msra.mxu0 %v61_v42  ;;  %370 = vmatprep.subr.mxu1 %v1150_v0  ;;  %v48_v22 = vld [vmem:[%s1929_s0 + $0xc8] sm:$0xff]  ;;  %v47_v23 = vld [vmem:[%s1929_s0 + $0xc0] sm:$0xff]  ;;  %v50_v24 = vld [vmem:[%s1929_s0 + $0xd8] sm:$0xff] }
  0x1e   :  { %209 = vmatprep.subr.mxu0 %v59_v43  ;;  %371 = vmatpush1.msra.mxu1 %v60_v44  ;;  %v49_v25 = vld [vmem:[%s1929_s0 + $0xd0] sm:$0xff]  ;;  %v52_v26 = vld [vmem:[%s1929_s0 + $0xe8] sm:$0xff]  ;;  %v51_v27 = vld [vmem:[%s1929_s0 + $0xe0] sm:$0xff] }
  0x1f   :  { %210 = vmatpush1.msra.mxu0 %v58_v45  ;;  %372 = vmatprep.subr.mxu1 %v1150_v0  ;;  %v54_v28 = vld [vmem:[%s1929_s0 + $0xf8] sm:$0xff]  ;;  %v53_v29 = vld [vmem:[%s1929_s0 + $0xf0] sm:$0xff]  ;;  %v802_v35 = vld [vmem:[%s1930_s4 + $0xe8] sm:$0xff] }
  0x20   :  { %211 = vmatprep.subr.mxu0 %v56_v46  ;;  %373 = vmatpush1.msra.mxu1 %v57_v47  ;;  %v804_v30 = vld [vmem:[%s1930_s4 + $0xf8] sm:$0xff]  ;;  %v803_v32 = vld [vmem:[%s1930_s4 + $0xf0] sm:$0xff]  ;;  %v786_v36 = vld [vmem:[%s1930_s4 + $0x68] sm:$0xff] }
  0x21   :  { %212 = vmatpush1.msra.mxu0 %v55_v48  ;;  %398 = vmatprep.subr.mxu1 %v1150_v0  ;;  %v788_v31 = vld [vmem:[%s1930_s4 + $0x78] sm:$0xff]  ;;  %v787_v33 = vld [vmem:[%s1930_s4 + $0x70] sm:$0xff]  ;;  %v801_v38 = vld [vmem:[%s1930_s4 + $0xe0] sm:$0xff] }
  0x22   :  { %237 = vmatprep.subr.mxu0 %v113_v49  ;;  %399 = vmatpush2.msra.mxu1 %v114_v50  ;;  %v820_v34 = vld [vmem:[%s1930_s4 + $0x178] sm:$0xff]  ;;  %v819_v37 = vld [vmem:[%s1930_s4 + $0x170] sm:$0xff]  ;;  %v785_v39 = vld [vmem:[%s1930_s4 + $0x60] sm:$0xff] }
  0x23   :  { %238 = vmatpush2.msra.mxu0 %v112_v51  ;;  %400 = vmatprep.subr.mxu1 %v1150_v0  ;;  %v818_v40 = vld [vmem:[%s1930_s4 + $0x168] sm:$0xff]  ;;  %v800_v41 = vld [vmem:[%s1930_s4 + $0xd8] sm:$0xff]  ;;  %v817_v43 = vld [vmem:[%s1930_s4 + $0x160] sm:$0xff] }
  0x24   :  { %239 = vmatprep.subr.mxu0 %v110_v52  ;;  %401 = vmatpush2.msra.mxu1 %v111_v53  ;;  %v784_v42 = vld [vmem:[%s1930_s4 + $0x58] sm:$0xff]  ;;  %v799_v44 = vld [vmem:[%s1930_s4 + $0xd0] sm:$0xff]  ;;  %v798_v48 = vld [vmem:[%s1930_s4 + $0xc8] sm:$0xff] }
  0x25   :  { %240 = vmatpush2.msra.mxu0 %v109_v54  ;;  %402 = vmatprep.subr.mxu1 %v1150_v0  ;;  %v783_v45 = vld [vmem:[%s1930_s4 + $0x50] sm:$0xff]  ;;  %v816_v46 = vld [vmem:[%s1930_s4 + $0x158] sm:$0xff]  ;;  %v782_v49 = vld [vmem:[%s1930_s4 + $0x48] sm:$0xff] }
  0x26   :  { %241 = vmatprep.subr.mxu0 %v107_v55  ;;  %403 = vmatpush2.msra.mxu1 %v108_v56  ;;  %v815_v47 = vld [vmem:[%s1930_s4 + $0x150] sm:$0xff]  ;;  %v797_v50 = vld [vmem:[%s1930_s4 + $0xc0] sm:$0xff]  ;;  %v814_v52 = vld [vmem:[%s1930_s4 + $0x148] sm:$0xff] }
  0x27   :  { %242 = vmatpush2.msra.mxu0 %v106_v57  ;;  %404 = vmatprep.subr.mxu1 %v1150_v0  ;;  %v781_v51 = vld [vmem:[%s1930_s4 + $0x40] sm:$0xff]  ;;  %v812_v54 = vld [vmem:[%s1930_s4 + $0x138] sm:$0xff]  ;;  %v811_v56 = vld [vmem:[%s1930_s4 + $0x130] sm:$0xff] }
  0x28   :  { %243 = vmatprep.subr.mxu0 %v104_v58  ;;  %405 = vmatpush2.msra.mxu1 %v105_v59  ;;  %v813_v53 = vld [vmem:[%s1930_s4 + $0x140] sm:$0xff]  ;;  %v796_v55 = vld [vmem:[%s1930_s4 + $0xb8] sm:$0xff]  ;;  %v795_v58 = vld [vmem:[%s1930_s4 + $0xb0] sm:$0xff] }
  0x29   :  { %1044 = vmatprep.mubr.msk.f32.mxu1 %vm132_vm0, %v24_v60  ;;  %244 = vmatpush2.msra.mxu0 %v103_v61  ;;  %v780_v57 = vld [vmem:[%s1930_s4 + $0x38] sm:$0xff]  ;;  %v779_v59 = vld [vmem:[%s1930_s4 + $0x30] sm:$0xff]  ;;  %v809_v61 = vld [vmem:[%s1930_s4 + $0x120] sm:$0xff] }
  0x2a   :  { %1028 = vmatprep.mubr.msk.f32.mxu0 %vm132_vm0, %v24_v60  ;;  %407 = vmatmul.mubr.f32.vlgmr.msra.gmra.mxu1 %v23_v62  ;;  %v810_v60 = vld [vmem:[%s1930_s4 + $0x128] sm:$0xff] }
  0x2b   :  { %246 = vmatmul.mubr.f32.vlgmr.msra.gmra.mxu0 %v23_v62  ;;  %1045 = vmatprep.mubr.msk.f32.mxu1 %vm132_vm0, %v26_v63  ;;  %v794_v62 = vld [vmem:[%s1930_s4 + $0xa8] sm:$0xff] }
  0x2c   :  { %1029 = vmatprep.mubr.msk.f32.mxu0 %vm132_vm0, %v26_v63  ;;  %1113 = vmatprep.subr.mxu1 %v1150_v0  ;;  %v778_v63 = vld [vmem:[%s1930_s4 + $0x28] sm:$0xff] }
  0x2d   :  { %1061 = vmatprep.subr.mxu0 %v804_v30  ;;  %1114 = vmatpush3.msra.mxu1 %v820_v34 }
  0x2e   :  { %412 = vmatmul.mubr.f32.gmra.mxu1 %v25_v1  ;;  %1062 = vmatpush3.msra.mxu0 %v788_v31 }
  0x2f   :  { %252 = vmatmul.mubr.f32.gmra.mxu0 %v25_v1  ;;  %1046 = vmatprep.mubr.msk.f32.mxu1 %vm132_vm0, %v28_v2  ;;  %v808_v1 = vld [vmem:[%s1930_s4 + $0x118] sm:$0xff] }
  0x30   :  { %1030 = vmatprep.mubr.msk.f32.mxu0 %vm132_vm0, %v28_v2  ;;  %1063 = vmatprep.subr.mxu0 %v803_v32  ;;  %v793_v2 = vld [vmem:[%s1930_s4 + $0xa0] sm:$0xff] }
  0x31   :  { %1115 = vmatprep.subr.mxu1 %v1150_v0  ;;  %1064 = vmatpush3.msra.mxu0 %v787_v33 }
  0x32   :  { %417 = vmatmul.mubr.f32.gmra.mxu1 %v27_v3  ;;  %1065 = vmatprep.subr.mxu0 %v802_v35 }
  0x33   :  { %258 = vmatmul.mubr.f32.gmra.mxu0 %v27_v3  ;;  %1047 = vmatprep.mubr.msk.f32.mxu1 %vm132_vm0, %v30_v4  ;;  %v777_v3 = vld [vmem:[%s1930_s4 + $0x20] sm:$0xff] }
  0x34   :  { %1031 = vmatprep.mubr.msk.f32.mxu0 %vm132_vm0, %v30_v4  ;;  %1066 = vmatpush3.msra.mxu0 %v786_v36  ;;  %v807_v4 = vld [vmem:[%s1930_s4 + $0x110] sm:$0xff] }
  0x35   :  { %1116 = vmatpush3.msra.mxu1 %v819_v37  ;;  %1067 = vmatprep.subr.mxu0 %v801_v38 }
  0x36   :  { %422 = vmatmul.mubr.f32.gmra.mxu1 %v29_v5  ;;  %1068 = vmatpush3.msra.mxu0 %v785_v39 }
  0x37   :  { %264 = vmatmul.mubr.f32.gmra.mxu0 %v29_v5  ;;  %1048 = vmatprep.mubr.msk.f32.mxu1 %vm132_vm0, %v32_v6  ;;  %v792_v5 = vld [vmem:[%s1930_s4 + $0x98] sm:$0xff] }
  0x38   :  { %1032 = vmatprep.mubr.msk.f32.mxu0 %vm132_vm0, %v32_v6  ;;  %1117 = vmatprep.subr.mxu1 %v1150_v0  ;;  %v776_v6 = vld [vmem:[%s1930_s4 + $0x18] sm:$0xff] }
  0x39   :  { %1118 = vmatpush3.msra.mxu1 %v818_v40  ;;  %1069 = vmatprep.subr.mxu0 %v800_v41 }
  0x3a   :  { %427 = vmatmul.mubr.f32.gmra.mxu1 %v31_v7  ;;  %1119 = vmatprep.subr.mxu1 %v1150_v0 }
  0x3b   :  { %270 = vmatmul.mubr.f32.gmra.mxu0 %v31_v7  ;;  %1049 = vmatprep.mubr.msk.f32.mxu1 %vm132_vm0, %v34_v8  ;;  %v806_v7 = vld [vmem:[%s1930_s4 + $0x108] sm:$0xff] }
  0x3c   :  { %1033 = vmatprep.mubr.msk.f32.mxu0 %vm132_vm0, %v34_v8  ;;  %1070 = vmatpush3.msra.mxu0 %v784_v42  ;;  %v791_v8 = vld [vmem:[%s1930_s4 + $0x90] sm:$0xff] }
  0x3d   :  { %1120 = vmatpush3.msra.mxu1 %v817_v43  ;;  %1071 = vmatprep.subr.mxu0 %v799_v44 }
  0x3e   :  { %432 = vmatmul.mubr.f32.gmra.mxu1 %v33_v9  ;;  %1121 = vmatprep.subr.mxu1 %v1150_v0 }
  0x3f   :  { %276 = vmatmul.mubr.f32.gmra.mxu0 %v33_v9  ;;  %1050 = vmatprep.mubr.msk.f32.mxu1 %vm132_vm0, %v36_v10  ;;  %v775_v9 = vld [vmem:[%s1930_s4 + $0x10] sm:$0xff] }
  0x40   :  { %1034 = vmatprep.mubr.msk.f32.mxu0 %vm132_vm0, %v36_v10  ;;  %1072 = vmatpush3.msra.mxu0 %v783_v45  ;;  %v790_v10 = vld [vmem:[%s1930_s4 + $0x88] sm:$0xff] }
  0x41   :  { %1122 = vmatpush3.msra.mxu1 %v816_v46  ;;  %1073 = vmatprep.subr.mxu0 %v798_v48 }
  0x42   :  { %437 = vmatmul.mubr.f32.gmra.mxu1 %v35_v11  ;;  %1123 = vmatprep.subr.mxu1 %v1150_v0 }
  0x43   :  { %282 = vmatmul.mubr.f32.gmra.mxu0 %v35_v11  ;;  %1051 = vmatprep.mubr.msk.f32.mxu1 %vm132_vm0, %v38_v12  ;;  %v774_v11 = vld [vmem:[%s1930_s4 + $0x8] sm:$0xff] }
  0x44   :  { %1035 = vmatprep.mubr.msk.f32.mxu0 %vm132_vm0, %v38_v12  ;;  %1124 = vmatpush3.msra.mxu1 %v815_v47  ;;  %v789_v12 = vld [vmem:[%s1930_s4 + $0x80] sm:$0xff] }
  0x45   :  { %1125 = vmatprep.subr.mxu1 %v1150_v0  ;;  %1074 = vmatpush3.msra.mxu0 %v782_v49 }
  0x46   :  { %442 = vmatmul.mubr.f32.gmra.mxu1 %v37_v13  ;;  %1075 = vmatprep.subr.mxu0 %v797_v50 }
  0x47   :  { %288 = vmatmul.mubr.f32.gmra.mxu0 %v37_v13  ;;  %1052 = vmatprep.mubr.msk.f32.mxu1 %vm132_vm0, %v40_v14  ;;  %v805_v13 = vld [vmem:[%s1930_s4 + $0x100] sm:$0xff] }
  0x48   :  { %1036 = vmatprep.mubr.msk.f32.mxu0 %vm132_vm0, %v40_v14  ;;  %1126 = vmatpush3.msra.mxu1 %v814_v52  ;;  %v773_v14 = vld [vmem:[%s1930_s4] sm:$0xff] }
  0x49   :  { %1076 = vmatpush3.msra.mxu0 %v781_v51  ;;  %1127 = vmatprep.subr.mxu1 %v1150_v0 }
  0x4a   :  { %447 = vmatmul.mubr.f32.gmra.mxu1 %v39_v15  ;;  %1077 = vmatprep.subr.mxu0 %v796_v55 }
  0x4b   :  { %294 = vmatmul.mubr.f32.gmra.mxu0 %v39_v15  ;;  %1053 = vmatprep.mubr.msk.f32.mxu1 %vm132_vm0, %v42_v16  ;;  %v117_v15 = vlaneseq }
  0x4c   :  { %1037 = vmatprep.mubr.msk.f32.mxu0 %vm132_vm0, %v42_v16  ;;  %1128 = vmatpush3.msra.mxu1 %v813_v53 }
  0x4d   :  { %1129 = vmatprep.subr.mxu1 %v1150_v0  ;;  %1078 = vmatpush3.msra.mxu0 %v780_v57  ;;  %v118_v16 = vshrl.u32 %v117_v15, 7 }
  0x4e   :  { %452 = vmatmul.mubr.f32.gmra.mxu1 %v41_v17  ;;  %1079 = vmatprep.subr.mxu0 %v795_v58 }
  0x4f   :  { %300 = vmatmul.mubr.f32.gmra.mxu0 %v41_v17  ;;  %1054 = vmatprep.mubr.msk.f32.mxu1 %vm132_vm0, %v44_v18  ;;  %v127_v17 = vsub.s32 2, %v118_v16 }
  0x50   :  { %1038 = vmatprep.mubr.msk.f32.mxu0 %vm132_vm0, %v44_v18  ;;  %1130 = vmatpush3.msra.mxu1 %v812_v54  ;;  %v115_v18 = vld [vmem:[%s1931_s2] sm:$0x7] }
  0x51   :  { %1131 = vmatprep.subr.mxu1 %v1150_v0  ;;  %1080 = vmatpush3.msra.mxu0 %v779_v59 }
  0x52   :  { %457 = vmatmul.mubr.f32.gmra.mxu1 %v43_v19  ;;  %1081 = vmatprep.subr.mxu0 %v794_v62 }
  0x53   :  { %306 = vmatmul.mubr.f32.gmra.mxu0 %v43_v19  ;;  %1055 = vmatprep.mubr.msk.f32.mxu1 %vm132_vm0, %v46_v20  ;;  %v1679_v19 = vrot.slane %v115_v18, %v127_v17 }
  0x54   :  { %1039 = vmatprep.mubr.msk.f32.mxu0 %vm132_vm0, %v46_v20  ;;  %1132 = vmatpush3.msra.mxu1 %v811_v56  ;;  %v119_v20 = vsub.s32 0, %v118_v16 }
  0x55   :  { %1133 = vmatprep.subr.mxu1 %v1150_v0  ;;  %1082 = vmatpush3.msra.mxu0 %v778_v63 }
  0x56   :  { %462 = vmatmul.mubr.f32.gmra.mxu1 %v45_v21  ;;  %1083 = vmatprep.subr.mxu0 %v793_v2 }
  0x57   :  { %312 = vmatmul.mubr.f32.gmra.mxu0 %v45_v21  ;;  %1056 = vmatprep.mubr.msk.f32.mxu1 %vm132_vm0, %v48_v22 }
  0x58   :  { %1040 = vmatprep.mubr.msk.f32.mxu0 %vm132_vm0, %v48_v22  ;;  %1134 = vmatpush3.msra.mxu1 %v810_v60 }
  0x59   :  { %1135 = vmatprep.subr.mxu1 %v1150_v0  ;;  %1084 = vmatpush3.msra.mxu0 %v777_v3 }
  0x5a   :  { %467 = vmatmul.mubr.f32.gmra.mxu1 %v47_v23  ;;  %1085 = vmatprep.subr.mxu0 %v792_v5 }
  0x5b   :  { %318 = vmatmul.mubr.f32.gmra.mxu0 %v47_v23  ;;  %1057 = vmatprep.mubr.msk.f32.mxu1 %vm132_vm0, %v50_v24 }
  0x5c   :  { %1041 = vmatprep.mubr.msk.f32.mxu0 %vm132_vm0, %v50_v24  ;;  %1136 = vmatpush3.msra.mxu1 %v809_v61 }
  0x5d   :  { %1137 = vmatprep.subr.mxu1 %v1150_v0  ;;  %1086 = vmatpush3.msra.mxu0 %v776_v6 }
  0x5e   :  { %472 = vmatmul.mubr.f32.gmra.mxu1 %v49_v25  ;;  %1087 = vmatprep.subr.mxu0 %v791_v8 }
  0x5f   :  { %324 = vmatmul.mubr.f32.gmra.mxu0 %v49_v25  ;;  %1058 = vmatprep.mubr.msk.f32.mxu1 %vm132_vm0, %v52_v26  ;;  %v123_v25 = vsub.s32 1, %v118_v16 }
  0x60   :  { %1042 = vmatprep.mubr.msk.f32.mxu0 %vm132_vm0, %v52_v26  ;;  %1138 = vmatpush3.msra.mxu1 %v808_v1  ;;  %v1685_v26 = vrot.slane %v115_v18, %v119_v20 }
  0x61   :  { %1139 = vmatprep.subr.mxu1 %v1150_v0  ;;  %1088 = vmatpush3.msra.mxu0 %v775_v9  ;;  %v1691_v33 = vrot.slane %v115_v18, %v123_v25 }
  0x62   :  { %477 = vmatmul.mubr.f32.gmra.mxu1 %v51_v27  ;;  %1089 = vmatprep.subr.mxu0 %v790_v10 }
  0x63   :  { %330 = vmatmul.mubr.f32.gmra.mxu0 %v51_v27  ;;  %1059 = vmatprep.mubr.msk.f32.mxu1 %vm132_vm0, %v54_v28 }
  0x64   :  { %1043 = vmatprep.mubr.msk.f32.mxu0 %vm132_vm0, %v54_v28  ;;  %1140 = vmatpush3.msra.mxu1 %v807_v4  ;;  %v537_v28 = vadd.s32 8, %v118_v16 }
  0x65   :  { %1141 = vmatprep.subr.mxu1 %v1150_v0  ;;  %1090 = vmatpush3.msra.mxu0 %v774_v11 }
  0x66   :  { %482 = vmatmul.mubr.f32.gmra.mxu1 %v53_v29  ;;  %1091 = vmatprep.subr.mxu0 %v789_v12 }
  0x67   :  { %336 = vmatmul.mubr.f32.gmra.mxu0 %v53_v29  ;;  %1142 = vmatpush3.msra.mxu1 %v806_v7 }
  0x68   :  { %1143 = vmatprep.subr.mxu1 %v1150_v0  ;;  %1145 = vmatprep.mubr.msk.f32.mxu1 %vm1151_vm1, %v1150_v0  ;;  %v538_v0 = vld [vmem:[%s1932_s3] sm:$0x7] }
  0x69   :  { %1144 = vmatpush3.msra.mxu1 %v805_v13  ;;  %1092 = vmatpush3.msra.mxu0 %v773_v14  ;;  %v550_v22 = vrot.slane %v538_v0, %v127_v17  ;;  %v542_v41 = vrot.slane %v538_v0, %v119_v20  ;;  %v546_v53 = vrot.slane %v538_v0, %v123_v25 }
  0x6b   :  { %vm1687_vm2 = vcmp.le.s32.totalorder %v118_v16, %v550_v22  ;;  %vm1695_vm3 = vcmp.le.s32.totalorder %v537_v28, %v550_v22  ;;  %vm1706_vm4 = vcmp.le.s32.totalorder %v537_v28, %v542_v41  ;;  %vm1711_vm5 = vcmp.le.s32.totalorder %v118_v16, %v542_v41 }
  0x6c   :  { %vm1717_vm6 = vcmp.le.s32.totalorder %v537_v28, %v546_v53  ;;  %vm1726_vm7 = vcmp.le.s32.totalorder %v118_v16, %v546_v53 }
  0xea   :  { %v408_v21 = vpop.f32.mrf.mxu1 }
  0xeb   :  { %v409_v23 = vadd.f32 %v408_v21, %v1679_v19  ;;  %v247_v24 = vpop.f32.mrf.mxu0 }
  0xec   :  { %v410_v27 = vpop.f32.mrf.mxu1  ;;  %v248_v36 = vadd.f32 %v247_v24, %v1685_v26 }
  0xed   :  { %v489_v29 = vmax.f32 %v409_v23, 0.0  ;;  %v249_v30 = vpop.f32.mrf.mxu0 }
  0xee   :  { %v413_v32 = vpop.f32.mrf.mxu1  ;;  %v250_v47 = vadd.f32 %v249_v30, %v1691_v33  ;;  %v487_v52 = vmax.f32 %v248_v36, 0.0 }
  0xef   :  { %v414_v34 = vadd.f32 %v413_v32, %v1679_v19  ;;  %v253_v35 = vpop.f32.mrf.mxu0  ;;  %v559_v40 = vsel %vm1687_vm2, %v489_v29, 0.0 }
  0xf0   :  { %v254_v38 = vadd.f32 %v253_v35, %v1685_v26  ;;  %v415_v39 = vpop.f32.mrf.mxu1  ;;  %v488_v63 = vmax.f32 %v250_v47, 0.0  ;;  %v557_v5 = vsel %vm1711_vm5, %v487_v52, 0.0 }
  0xf1   :  { %v492_v42 = vmax.f32 %v414_v34, 0.0  ;;  %v255_v43 = vpop.f32.mrf.mxu0 }
  0xf2   :  { %v490_v44 = vmax.f32 %v254_v38, 0.0  ;;  %v256_v45 = vadd.f32 %v255_v43, %v1691_v33  ;;  %v418_v46 = vpop.f32.mrf.mxu1  ;;  %v558_v16 = vsel %vm1726_vm7, %v488_v63, 0.0 }
  0xf3   :  { %v562_v48 = vsel %vm1695_vm3, %v492_v42, 0.0  ;;  %v419_v50 = vadd.f32 %v418_v46, %v1679_v19  ;;  %v259_v51 = vpop.f32.mrf.mxu0 }
  0xf4   :  { %v619_v54 = vmax.f32 %v559_v40, %v562_v48  ;;  %v420_v55 = vpop.f32.mrf.mxu1  ;;  %v560_v58 = vsel %vm1706_vm4, %v490_v44, 0.0  ;;  %v491_v59 = vmax.f32 %v256_v45, 0.0  ;;  %v260_v61 = vadd.f32 %v259_v51, %v1685_v26 }
  0xf5   :  { %v261_v57 = vpop.f32.mrf.mxu0  ;;  %v495_v1 = vmax.f32 %v419_v50, 0.0  ;;  %v605_v10 = vmax.f32 %v557_v5, %v560_v58 }
  0xf6   :  { %v423_v62 = vpop.f32.mrf.mxu1  ;;  %v262_v2 = vadd.f32 %v261_v57, %v1691_v33  ;;  %v620_v9 = vrot.slane %v619_v54, 4  ;;  %v561_v13 = vsel %vm1717_vm6, %v491_v59, 0.0  ;;  %v493_v14 = vmax.f32 %v260_v61, 0.0 }
  0xf7   :  { %v424_v3 = vadd.f32 %v423_v62, %v1679_v19  ;;  %v265_v4 = vpop.f32.mrf.mxu0  ;;  %v565_v20 = vsel %vm1687_vm2, %v495_v1, 0.0  ;;  %v606_v28 = vrot.slane %v605_v10, 4  ;;  %v612_v29 = vmax.f32 %v558_v16, %v561_v13 }
  0xf8   :  { %v266_v7 = vadd.f32 %v265_v4, %v1685_v26  ;;  %v425_v8 = vpop.f32.mrf.mxu1  ;;  %v494_v0 = vmax.f32 %v262_v2, 0.0  ;;  %v621_v32 = vmax.f32 %v619_v54, %v620_v9  ;;  %v563_v34 = vsel %vm1711_vm5, %v493_v14, 0.0 }
  0xf9   :  { %v498_v11 = vmax.f32 %v424_v3, 0.0  ;;  %v267_v12 = vpop.f32.mrf.mxu0  ;;  %v607_v46 = vmax.f32 %v605_v10, %v606_v28  ;;  %v613_v47 = vrot.slane %v612_v29, 4 }
  0xfa   :  { %v496_v15 = vmax.f32 %v266_v7, 0.0  ;;  %v268_v17 = vadd.f32 %v267_v12, %v1691_v33  ;;  %v428_v18 = vpop.f32.mrf.mxu1  ;;  %v564_v38 = vsel %vm1726_vm7, %v494_v0, 0.0  ;;  %v622_v50 = vrot.slane %v621_v32, 2 }
  0xfb   :  { %v271_v21 = vpop.f32.mrf.mxu0  ;;  %v568_v22 = vsel %vm1695_vm3, %v498_v11, 0.0  ;;  %v429_v25 = vadd.f32 %v428_v18, %v1679_v19  ;;  %v608_v3 = vrot.slane %v607_v46, 2  ;;  %v614_v4 = vmax.f32 %v612_v29, %v613_v47 }
  0xfc   :  { %v566_v23 = vsel %vm1706_vm4, %v496_v15, 0.0  ;;  %v497_v24 = vmax.f32 %v268_v17, 0.0  ;;  %v430_v27 = vpop.f32.mrf.mxu1  ;;  %v640_v39 = vmax.f32 %v565_v20, %v568_v22  ;;  %v272_v41 = vadd.f32 %v271_v21, %v1685_v26 }
  0xfd   :  { %v273_v30 = vpop.f32.mrf.mxu0  ;;  %v626_v40 = vmax.f32 %v563_v34, %v566_v23  ;;  %v501_v44 = vmax.f32 %v429_v25, 0.0  ;;  %v1756_v9 = vmax.f32 %v621_v32, %v622_v50 }
  0xfe   :  { %v567_v35 = vsel %vm1717_vm6, %v497_v24, 0.0  ;;  %v433_v36 = vpop.f32.mrf.mxu1  ;;  %v274_v51 = vadd.f32 %v273_v30, %v1691_v33  ;;  %v641_v54 = vrot.slane %v640_v39, 4  ;;  %v499_v57 = vmax.f32 %v272_v41, 0.0 }
  0xff   :  { %v277_v42 = vpop.f32.mrf.mxu0  ;;  %v633_v43 = vmax.f32 %v564_v38, %v567_v35  ;;  %v434_v52 = vadd.f32 %v433_v36, %v1679_v19  ;;  %v627_v55 = vrot.slane %v626_v40, 4  ;;  %v571_v62 = vsel %vm1687_vm2, %v501_v44, 0.0 }
 0x100   :  { %v435_v45 = vpop.f32.mrf.mxu1  ;;  %v278_v58 = vadd.f32 %v277_v42, %v1685_v26  ;;  %v500_v5 = vmax.f32 %v274_v51, 0.0  ;;  %v642_v14 = vmax.f32 %v640_v39, %v641_v54  ;;  %v569_v15 = vsel %vm1711_vm5, %v499_v57, 0.0 }
 0x101   :  { %v279_v48 = vpop.f32.mrf.mxu0  ;;  %v634_v61 = vrot.slane %v633_v43, 4  ;;  %v504_v63 = vmax.f32 %v434_v52, 0.0  ;;  %v628_v20 = vmax.f32 %v626_v40, %v627_v55  ;;  %v609_v24 = vmax.f32 %v607_v46, %v608_v3 }
 0x102   :  { %v438_v53 = vpop.f32.mrf.mxu1  ;;  %v280_v1 = vadd.f32 %v279_v48, %v1691_v33  ;;  %v502_v7 = vmax.f32 %v278_v58, 0.0  ;;  %v570_v25 = vsel %vm1726_vm7, %v500_v5, 0.0  ;;  %v624_v35 = vrot.slane %v1756_v9, 1 }
 0x103   :  { %v283_v59 = vpop.f32.mrf.mxu0  ;;  %v574_v10 = vsel %vm1695_vm3, %v504_v63, 0.0  ;;  %v439_v12 = vadd.f32 %v438_v53, %v1679_v19  ;;  %v635_v0 = vmax.f32 %v633_v43, %v634_v61  ;;  %v615_v36 = vrot.slane %v614_v4, 2 }
 0x104   :  { %v440_v2 = vpop.f32.mrf.mxu1  ;;  %v503_v11 = vmax.f32 %v280_v1, 0.0  ;;  %v661_v17 = vmax.f32 %v571_v62, %v574_v10  ;;  %v572_v18 = vsel %vm1706_vm4, %v502_v7, 0.0  ;;  %v284_v32 = vadd.f32 %v283_v59, %v1685_v26 }
 0x105   :  { %v285_v8 = vpop.f32.mrf.mxu0  ;;  %v647_v21 = vmax.f32 %v569_v15, %v572_v18  ;;  %v507_v30 = vmax.f32 %v439_v12, 0.0  ;;  %v643_v40 = vrot.slane %v642_v14, 2  ;;  %v629_v41 = vrot.slane %v628_v20, 2 }
 0x106   :  { %v443_v13 = vpop.f32.mrf.mxu1  ;;  %v573_v22 = vsel %vm1717_vm6, %v503_v11, 0.0  ;;  %v662_v27 = vrot.slane %v661_v17, 4  ;;  %v636_v42 = vrot.slane %v635_v0, 2  ;;  %v610_v45 = vrot.slane %v609_v24, 1 }
 0x107   :  { %v289_v16 = vpop.f32.mrf.mxu0  ;;  %v654_v29 = vmax.f32 %v570_v25, %v573_v22  ;;  %v648_v38 = vrot.slane %v647_v21, 4  ;;  %v444_v43 = vadd.f32 %v443_v13, %v1679_v19  ;;  %v505_v47 = vmax.f32 %v284_v32, 0.0 }
 0x108   :  { %v445_v23 = vpop.f32.mrf.mxu1  ;;  %v663_v46 = vmax.f32 %v661_v17, %v662_v27  ;;  %v290_v48 = vadd.f32 %v289_v16, %v1685_v26  ;;  %v577_v52 = vsel %vm1687_vm2, %v507_v30, 0.0  ;;  %v286_v53 = vadd.f32 %v285_v8, %v1691_v33 }
 0x109   :  { %v291_v28 = vpop.f32.mrf.mxu0  ;;  %v655_v51 = vrot.slane %v654_v29, 4  ;;  %v510_v54 = vmax.f32 %v444_v43, 0.0  ;;  %v616_v57 = vmax.f32 %v614_v4, %v615_v36  ;;  %v649_v58 = vmax.f32 %v647_v21, %v648_v38 }
 0x10a   :  { %v448_v34 = vpop.f32.mrf.mxu1  ;;  %v508_v59 = vmax.f32 %v290_v48, 0.0  ;;  %v292_v61 = vadd.f32 %v291_v28, %v1691_v33  ;;  %v644_v63 = vmax.f32 %v642_v14, %v643_v40  ;;  %v630_v1 = vmax.f32 %v628_v20, %v629_v41 }
 0x10b   :  { %v295_v39 = vpop.f32.mrf.mxu0  ;;  %v637_v2 = vmax.f32 %v635_v0, %v636_v42  ;;  %v580_v3 = vsel %vm1695_vm3, %v510_v54, 0.0  ;;  %v664_v7 = vrot.slane %v663_v46, 2  ;;  %v575_v10 = vsel %vm1711_vm5, %v505_v47, 0.0 }
 0x10c   :  { %v450_v44 = vpop.f32.mrf.mxu1  ;;  %v682_v8 = vmax.f32 %v577_v52, %v580_v3  ;;  %v578_v4 = vsel %vm1706_vm4, %v508_v59, 0.0  ;;  %v656_v12 = vmax.f32 %v654_v29, %v655_v51  ;;  %v506_v13 = vmax.f32 %v286_v53, 0.0 }
 0x10d   :  { %v297_v50 = vpop.f32.mrf.mxu0  ;;  %v668_v15 = vmax.f32 %v575_v10, %v578_v4  ;;  %v509_v17 = vmax.f32 %v292_v61, 0.0  ;;  %v650_v18 = vrot.slane %v649_v58, 2  ;;  %v625_v0 = vmax.f32 %v1756_v9, %v624_v35 }
 0x10e   :  { %v453_v55 = vpop.f32.mrf.mxu1  ;;  %v683_v16 = vrot.slane %v682_v8, 4  ;;  %v617_v21 = vrot.slane %v616_v57, 1  ;;  %v645_v22 = vrot.slane %v644_v63, 1  ;;  %v611_v27 = vmax.f32 %v609_v24, %v610_v45 }
 0x10f   :  { %v301_v62 = vpop.f32.mrf.mxu0  ;;  %v579_v23 = vsel %vm1717_vm6, %v509_v17, 0.0  ;;  %v631_v28 = vrot.slane %v630_v1, 1  ;;  %v669_v30 = vrot.slane %v668_v15, 4  ;;  %v638_v36 = vrot.slane %v637_v2, 1 }
 0x110   :  { %v455_v5 = vpop.f32.mrf.mxu1  ;;  %v684_v29 = vmax.f32 %v682_v8, %v683_v16  ;;  %v665_v38 = vmax.f32 %v663_v46, %v664_v7  ;;  %v657_v40 = vrot.slane %v656_v12, 2  ;;  %v576_v41 = vsel %vm1726_vm7, %v506_v13, 0.0 }
 0x111   :  { %v303_v11 = vpop.f32.mrf.mxu0  ;;  %v651_v9 = vmax.f32 %v649_v58, %v650_v18  ;;  %v675_v35 = vmax.f32 %v576_v41, %v579_v23  ;;  %v449_v43 = vadd.f32 %v448_v34, %v1679_v19  ;;  %v454_v44 = vadd.f32 %v453_v55, %v1679_v19 }
 0x112   :  { %v458_v14 = vpop.f32.mrf.mxu1  ;;  %v618_v24 = vmax.f32 %v616_v57, %v617_v21  ;;  %v646_v45 = vmax.f32 %v644_v63, %v645_v22  ;;  %v296_v48 = vadd.f32 %v295_v39, %v1685_v26  ;;  %v302_v51 = vadd.f32 %v301_v62, %v1685_v26 }
 0x113   :  { %v1783_v20 = vpop.f32.mrf.mxu0  ;;  %v632_v46 = vmax.f32 %v630_v1, %v631_v28  ;;  %v685_v53 = vrot.slane %v684_v29, 2  ;;  %v670_v54 = vmax.f32 %v668_v15, %v669_v30  ;;  %v298_v59 = vadd.f32 %v297_v50, %v1691_v33 }
 0x114   :  { %v460_v25 = vpop.f32.mrf.mxu1  ;;  %v639_v58 = vmax.f32 %v637_v2, %v638_v36  ;;  %v666_v3 = vrot.slane %v665_v38, 1  ;;  %v658_v34 = vmax.f32 %v656_v12, %v657_v40  ;;  %v304_v55 = vadd.f32 %v303_v11, %v1691_v33 }
 0x115   :  { %v1788_v32 = vpop.f32.mrf.mxu0  ;;  %v652_v57 = vrot.slane %v651_v9, 1  ;;  %v676_v63 = vrot.slane %v675_v35, 4  ;;  %v513_v7 = vmax.f32 %v449_v43, 0.0  ;;  %v516_v39 = vmax.f32 %v454_v44, 0.0 }
 0x116   :  { %v463_v42 = vpop.f32.mrf.mxu1  ;;  %v873_v62 = vsel %vm852_vm8, %v646_v45, %v625_v0  ;;  %v511_v1 = vmax.f32 %v296_v48, 0.0  ;;  %v514_v8 = vmax.f32 %v302_v51, 0.0  ;;  %v459_v50 = vadd.f32 %v458_v14, %v1679_v19 }
 0x117   :  { %v313_v47 = vpop.f32.mrf.mxu0  ;;  %v853_v2 = vsel %vm852_vm8, %v632_v46, %v611_v27  ;;  %v686_v13 = vmax.f32 %v684_v29, %v685_v53  ;;  %v671_v12 = vrot.slane %v670_v54, 2  ;;  %v512_v15 = vmax.f32 %v298_v59, 0.0 }
 0x118   :  { %v465_v52 = vpop.f32.mrf.mxu1  ;;  %v1804_v17 = vsel %vm852_vm8, %v639_v58, %v618_v24  ;;  %v667_v18 = vmax.f32 %v665_v38, %v666_v3  ;;  %v659_v16 = vrot.slane %v658_v34, 1  ;;  %v515_v21 = vmax.f32 %v304_v55, 0.0 }
 0x119   :  { %v315_v61 = vpop.f32.mrf.mxu0  ;;  %v653_v23 = vmax.f32 %v651_v9, %v652_v57  ;;  %v677_v0 = vmax.f32 %v675_v35, %v676_v63  ;;  %v583_v25 = vsel %vm1687_vm2, %v513_v7, 0.0  ;;  %v586_v14 = vsel %vm1695_vm3, %v516_v39, 0.0 }
 0x11a   :  { %v468_v5 = vpop.f32.mrf.mxu1  ;;  %v581_v27 = vsel %vm1711_vm5, %v511_v1, 0.0  ;;  %v584_v28 = vsel %vm1706_vm4, %v514_v8, 0.0  ;;  %v519_v29 = vmax.f32 %v459_v50, 0.0  ;;  %v308_v30 = vadd.f32 %v1783_v20, %v1685_v26 }
 0x11b   :  { %v1798_v10 = vpop.f32.mrf.mxu0  ;;  %v687_v40 = vrot.slane %v686_v13, 1  ;;  %v1816_v41 = vmax.f32 %v670_v54, %v671_v12  ;;  %v582_v9 = vsel %vm1726_vm7, %v512_v15, 0.0  ;;  %v464_v35 = vadd.f32 %v463_v42, %v1679_v19 }
 0x11c   :  { %v470_v4 = vpop.f32.mrf.mxu1  ;;  %v703_v43 = vmax.f32 %v583_v25, %v586_v14  ;;  %v585_v44 = vsel %vm1717_vm6, %v515_v21, 0.0  ;;  %v310_v24 = vadd.f32 %v1788_v32, %v1691_v33  ;;  %v314_v45 = vadd.f32 %v313_v47, %v1685_v26 }
 0x11d   :  { %v321_v11 = vpop.f32.mrf.mxu0  ;;  %v678_v48 = vrot.slane %v677_v0, 2  ;;  %v689_v51 = vmax.f32 %v581_v27, %v584_v28  ;;  %v522_v52 = vmax.f32 %v464_v35, 0.0  ;;  %v316_v46 = vadd.f32 %v315_v61, %v1691_v33 }
 0x11e   :  { %v473_v22 = vpop.f32.mrf.mxu1  ;;  %v589_v53 = vsel %vm1687_vm2, %v519_v29, 0.0  ;;  %v517_v42 = vmax.f32 %v308_v30, 0.0  ;;  %v520_v54 = vmax.f32 %v314_v45, 0.0  ;;  %v469_v59 = vadd.f32 %v468_v5, %v1679_v19 }
 0x11f   :  { %v325_v36 = vpop.f32.mrf.mxu0  ;;  %v1833_v32 = vsel %vm854_vm9, %v667_v18, %v873_v62  ;;  %v696_v47 = vmax.f32 %v582_v9, %v585_v44  ;;  %v592_v55 = vsel %vm1695_vm3, %v522_v52, 0.0  ;;  %v521_v57 = vmax.f32 %v316_v46, 0.0 }
 0x120   :  { %v475_v38 = vpop.f32.mrf.mxu1  ;;  %v1837_v63 = vmax.f32 %v658_v34, %v659_v16  ;;  %v704_v61 = vrot.slane %v703_v43, 4  ;;  %v518_v7 = vmax.f32 %v310_v24, 0.0  ;;  %v590_v39 = vsel %vm1706_vm4, %v520_v54, 0.0 }
 0x121   :  { %v327_v58 = vpop.f32.mrf.mxu0  ;;  %v1844_v5 = vsel %vm854_vm9, %v653_v23, %v853_v2  ;;  %v688_v8 = vmax.f32 %v686_v13, %v687_v40  ;;  %v673_v62 = vrot.slane %v1816_v41, 1  ;;  %v724_v50 = vmax.f32 %v589_v53, %v592_v55 }
 0x122   :  { %v1826_v20 = vpop.f32.mrf.mxu1  ;;  %v1847_v4 = vmax.f32 %v677_v0, %v678_v48  ;;  %v690_v12 = vrot.slane %v689_v51, 4  ;;  %v587_v34 = vsel %vm1711_vm5, %v517_v42, 0.0  ;;  %v525_v15 = vmax.f32 %v469_v59, 0.0 }
 0x123   :  { %v331_v18 = vpop.f32.mrf.mxu0  ;;  %v697_v21 = vrot.slane %v696_v47, 4  ;;  %v710_v25 = vmax.f32 %v587_v34, %v590_v39  ;;  %v591_v2 = vsel %vm1717_vm6, %v521_v57, 0.0  ;;  %v320_v13 = vadd.f32 %v1798_v10, %v1685_v26 }
 0x124   :  { %v480_v3 = vpop.f32.mrf.mxu1  ;;  %v705_v23 = vmax.f32 %v703_v43, %v704_v61  ;;  %v588_v0 = vsel %vm1726_vm7, %v518_v7, 0.0  ;;  %v322_v14 = vadd.f32 %v321_v11, %v1691_v33  ;;  %v474_v27 = vadd.f32 %v473_v22, %v1679_v19 }
 0x125   :  { %v725_v28 = vrot.slane %v724_v50, 4  ;;  %v523_v29 = vmax.f32 %v320_v13, 0.0  ;;  %v326_v30 = vadd.f32 %v325_v36, %v1685_v26  ;;  %v328_v38 = vadd.f32 %v327_v58, %v1691_v33  ;;  %v333_v43 = vpop.f32.mrf.mxu0 }
 0x126   :  { %v1841_v1 = vpop.f32.mrf.mxu1  ;;  %v717_v40 = vmax.f32 %v588_v0, %v591_v2  ;;  %v595_v9 = vsel %vm1687_vm2, %v525_v15, 0.0  ;;  %v524_v35 = vmax.f32 %v322_v14, 0.0  ;;  %v528_v10 = vmax.f32 %v474_v27, 0.0 }
 0x127   :  { %v691_v44 = vmax.f32 %v689_v51, %v690_v12  ;;  %v711_v24 = vrot.slane %v710_v25, 4  ;;  %v526_v45 = vmax.f32 %v326_v30, 0.0  ;;  %v527_v48 = vmax.f32 %v328_v38, 0.0 }
 0x128   :  { %v485_v16 = vpop.f32.mrf.mxu1  ;;  %v706_v11 = vrot.slane %v705_v23, 2  ;;  %v698_v52 = vmax.f32 %v696_v47, %v697_v21  ;;  %v593_v22 = vsel %vm1711_vm5, %v523_v29, 0.0  ;;  %v598_v36 = vsel %vm1695_vm3, %v528_v10, 0.0  ;;  %v337_v47 = vpop.f32.mrf.mxu0 }
 0x129   :  { %v594_v46 = vsel %vm1726_vm7, %v524_v35, 0.0  ;;  %v745_v53 = vmax.f32 %v595_v9, %v598_v36  ;;  %v596_v42 = vsel %vm1706_vm4, %v526_v45, 0.0  ;;  %v597_v51 = vsel %vm1717_vm6, %v527_v48, 0.0 }
 0x12a   :  { %v726_v54 = vmax.f32 %v724_v50, %v725_v28  ;;  %v718_v59 = vrot.slane %v717_v40, 4  ;;  %v731_v58 = vmax.f32 %v593_v22, %v596_v42  ;;  %v738_v3 = vmax.f32 %v594_v46, %v597_v51 }
 0x12b   :  { %v692_v55 = vrot.slane %v691_v44, 2  ;;  %v712_v57 = vmax.f32 %v710_v25, %v711_v24  ;;  %v746_v61 = vrot.slane %v745_v53, 4  ;;  %v479_v7 = vadd.f32 %v1826_v20, %v1679_v19  ;;  %v339_v20 = vpop.f32.mrf.mxu0 }
 0x12c   :  { %v1876_v39 = vmax.f32 %v1816_v41, %v673_v62  ;;  %v732_v12 = vrot.slane %v731_v58, 4  ;;  %v739_v34 = vrot.slane %v738_v3, 4  ;;  %v332_v15 = vadd.f32 %v331_v18, %v1685_v26 }
 0x12d   :  { %v1881_v50 = vsel %vm856_vm10, %v688_v8, %v1833_v32  ;;  %v699_v16 = vrot.slane %v698_v52, 2  ;;  %v747_v21 = vmax.f32 %v745_v53, %v746_v61  ;;  %v531_v2 = vmax.f32 %v479_v7, 0.0 }
 0x12e   :  { %v707_v13 = vmax.f32 %v705_v23, %v706_v11  ;;  %v727_v25 = vrot.slane %v726_v54, 2  ;;  %v719_v0 = vmax.f32 %v717_v40, %v718_v59  ;;  %v334_v14 = vadd.f32 %v333_v43, %v1691_v33 }
 0x12f   :  { %v693_v27 = vmax.f32 %v691_v44, %v692_v55  ;;  %v713_v41 = vrot.slane %v712_v57, 2  ;;  %v740_v62 = vmax.f32 %v738_v3, %v739_v34  ;;  %v484_v28 = vadd.f32 %v1841_v1, %v1679_v19 }
 0x130   :  { %v748_v18 = vrot.slane %v747_v21, 2  ;;  %v733_v29 = vmax.f32 %v731_v58, %v732_v12  ;;  %v529_v30 = vmax.f32 %v332_v15, 0.0  ;;  %v338_v32 = vadd.f32 %v337_v47, %v1685_v26 }
 0x131   :  { %v601_v8 = vsel %vm1687_vm2, %v531_v2, 0.0  ;;  %v530_v23 = vmax.f32 %v334_v14, 0.0  ;;  %v534_v38 = vmax.f32 %v484_v28, 0.0  ;;  %v340_v40 = vadd.f32 %v339_v20, %v1691_v33 }
 0x132   :  { %v700_v9 = vmax.f32 %v698_v52, %v699_v16  ;;  %v728_v35 = vmax.f32 %v726_v54, %v727_v25  ;;  %v720_v10 = vrot.slane %v719_v0, 2  ;;  %v532_v43 = vmax.f32 %v338_v32, 0.0 }
 0x133   :  { %v714_v44 = vmax.f32 %v712_v57, %v713_v41  ;;  %v741_v24 = vrot.slane %v740_v62, 2  ;;  %v604_v19 = vsel %vm1695_vm3, %v534_v38, 0.0  ;;  %v533_v1 = vmax.f32 %v340_v40, 0.0 }
 0x134   :  { %v734_v45 = vrot.slane %v733_v29, 2  ;;  %v599_v26 = vsel %vm1711_vm5, %v529_v30, 0.0  ;;  %v766_v31 = vmax.f32 %v601_v8, %v604_v19  ;;  %v602_v48 = vsel %vm1706_vm4, %v532_v43, 0.0 }
 0x135   :  { %v749_v33 = vmax.f32 %v747_v21, %v748_v18  ;;  %v600_v11 = vsel %vm1726_vm7, %v530_v23, 0.0  ;;  %v752_v52 = vmax.f32 %v599_v26, %v602_v48  ;;  %v603_v37 = vsel %vm1717_vm6, %v533_v1, 0.0 }
 0x136   :  { %v708_v22 = vrot.slane %v707_v13, 1  ;;  %v721_v36 = vmax.f32 %v719_v0, %v720_v10  ;;  %v767_v46 = vrot.slane %v766_v31, 4  ;;  %v759_v53 = vmax.f32 %v600_v11, %v603_v37 }
 0x137   :  { %v680_v56 = vrot.slane %v1847_v4, 1  ;;  %v729_v42 = vrot.slane %v728_v35, 1  ;;  %v742_v51 = vmax.f32 %v740_v62, %v741_v24  ;;  %v753_v49 = vrot.slane %v752_v52, 4 }
 0x138   :  { %v694_v54 = vrot.slane %v693_v27, 1  ;;  %v735_v59 = vmax.f32 %v733_v29, %v734_v45  ;;  %v768_v58 = vmax.f32 %v766_v31, %v767_v46  ;;  %v760_v6 = vrot.slane %v759_v53, 4 }
 0x139   :  { %v701_v3 = vrot.slane %v700_v9, 1  ;;  %v715_v47 = vrot.slane %v714_v44, 1  ;;  %v750_v55 = vrot.slane %v749_v33, 1  ;;  %v754_v60 = vmax.f32 %v752_v52, %v753_v49 }
 0x13a   :  { %v709_v57 = vmax.f32 %v707_v13, %v708_v22  ;;  %v722_v61 = vrot.slane %v721_v36, 1  ;;  %v769_v7 = vrot.slane %v768_v58, 2  ;;  %v761_v12 = vmax.f32 %v759_v53, %v760_v6 }
 0x13b   :  { %v681_v34 = vmax.f32 %v1847_v4, %v680_v56  ;;  %v730_v15 = vmax.f32 %v728_v35, %v729_v42  ;;  %v743_v16 = vrot.slane %v742_v51, 1  ;;  %v755_v21 = vrot.slane %v754_v60, 2 }
 0x13c   :  { %v695_v2 = vmax.f32 %v693_v27, %v694_v54  ;;  %v736_v25 = vrot.slane %v735_v59, 1  ;;  %v770_v0 = vmax.f32 %v768_v58, %v769_v7  ;;  %v762_v14 = vrot.slane %v761_v12, 2 }
 0x13d   :  { %v702_v20 = vmax.f32 %v700_v9, %v701_v3  ;;  %v716_v41 = vmax.f32 %v714_v44, %v715_v47  ;;  %v751_v62 = vmax.f32 %v749_v33, %v750_v55  ;;  %v756_v28 = vmax.f32 %v754_v60, %v755_v21  ;;  %v1060_v33 = vld [vmem:[%s1933_s5] ss:$0 sm:$0xff] }
 0x13e   :  { %v723_v18 = vmax.f32 %v721_v36, %v722_v61  ;;  %v771_v29 = vrot.slane %v770_v0, 1  ;;  %v763_v30 = vmax.f32 %v761_v12, %v762_v14  ;;  %v876_v13 = vsel %vm858_vm11, %v709_v57, %v1881_v50 }
 0x13f   :  { %v757_v32 = vrot.slane %v756_v28, 1  ;;  %v877_v4 = vsel %vm860_vm12, %v730_v15, %v876_v13  ;;  %v744_v8 = vmax.f32 %v742_v51, %v743_v16  ;;  %v867_v27 = vsel %vm854_vm9, %v1837_v63, %v1804_v17 }
 0x140   :  { %v737_v23 = vmax.f32 %v735_v59, %v736_v25  ;;  %v772_v38 = vmax.f32 %v770_v0, %v771_v29  ;;  %v764_v40 = vrot.slane %v763_v30, 1  ;;  %v868_v9 = vsel %vm856_vm10, %v681_v34, %v867_v27 }
 0x141   :  { %v857_v35 = vsel %vm856_vm10, %v1876_v39, %v1844_v5  ;;  %v758_v10 = vmax.f32 %v756_v28, %v757_v32  ;;  %v878_v50 = vsel %vm862_vm13, %v751_v62, %v877_v4  ;;  %v869_v43 = vsel %vm858_vm11, %v702_v20, %v868_v9 }
 0x142   :  { %v879_v44 = vsel %vm864_vm14, %v772_v38, %v878_v50  ;;  %v765_v24 = vmax.f32 %v763_v30, %v764_v40  ;;  %v870_v19 = vsel %vm860_vm12, %v723_v18, %v869_v43  ;;  %v859_v17 = vsel %vm858_vm11, %v695_v2, %v857_v35 }
 0x143   :  { %1146 = vmatmul.mubr.f32.vlgmr.msra.gmra.mxu1 %v879_v44  ;;  %v871_v63 = vsel %vm862_vm13, %v744_v8, %v870_v19  ;;  %v861_v1 = vsel %vm860_vm12, %v716_v41, %v859_v17 }
 0x144   :  { %v872_v45 = vsel %vm864_vm14, %v765_v24, %v871_v63  ;;  %v863_v5 = vsel %vm862_vm13, %v737_v23, %v861_v1 }
 0x145   :  { %947 = vmatprep.mubr.f32.mxu0 %v872_v45  ;;  %v865_v39 = vsel %vm864_vm14, %v758_v10, %v863_v5 }
 0x146   :  { %948 = vmatmul.mubr.f32.vlgmr.msra.gmra.mxu0 %v865_v39 }
 0x203   :  { %v1019_v26 = vpop.f32.mrf.mxu1 }
 0x205   :  { %v1147_v31 = vpop.f32.mrf.mxu1 }
 0x206   :  { %v1093_v48 = vpop.f32.mrf.mxu0 }
 0x208   :  { %v1094_v11 = vpop.f32.mrf.mxu0 }
 0x209   :  { %v1095_v52 = vadd.f32 %v1094_v11, %v1093_v48 }
 0x20b   :  { %v950_v37 = vadd.f32 %v1095_v52, %v1060_v33 }
 0x20d   :  { %v1020_v22 = vadd.f32 %v1019_v26, %v950_v37 }
 0x20f   :  { %1023 = vst [vmem:[%s1934_s6] sm:$0xff] %v1020_v22 }

</bundles_post_ra>
